<compile_context>
chip_gen: v7x
topology: tpu7x:2x2x1
jax: 0.10.0
libtpu: 0.0.40
codegen_flags: <defaults>
</compile_context>

<pallas_src>
import functools

import jax
import jax.numpy as jnp
from jax.experimental import pallas as pl
from jax.experimental.pallas import tpu as pltpu


def _ce2d_kernel(x_ref, t_ref, o_ref, *, ignore_index):
    """Per-block cross-entropy partial sums.

    x_ref: (Nb, C, THW)   logits block (native dtype; upcast to f32 here)
    t_ref: (Nb, 1, THW)   int32 target class indices block
    o_ref: (1, 1, 8, 128) f32 per-program partial tile (summed later in JAX)
    """
    x = x_ref[...].astype(jnp.float32)        # upcast in-kernel: HBM stays narrow
    t = t_ref[...]                            # (Nb, 1, THW) int32

    # numerically stable log-sum-exp over the channel (sublane) axis
    m = jnp.max(x, axis=1, keepdims=True)                                  # (Nb,1,THW)
    lse = jnp.log(jnp.sum(jnp.exp(x - m), axis=1, keepdims=True)) + m      # (Nb,1,THW)

    # gather logit of the target class via one-hot select (no dynamic gather on TPU)
    cls = jax.lax.broadcasted_iota(jnp.int32, x.shape, 1)                  # (Nb,C,THW)
    tgt_logit = jnp.sum(jnp.where(cls == t, x, 0.0),
                        axis=1, keepdims=True)                             # (Nb,1,THW)

    # per-pixel NLL; ignore_index pixels contribute 0 to the sum
    diff = lse - tgt_logit                                                 # (Nb,1,THW)
    diff = jnp.where(t != ignore_index, diff, 0.0)

    thw = diff.shape[-1]
    sub = jax.lax.broadcasted_iota(jnp.int32, (8, 128), 0)
    if thw % 128 == 0:
        # reduce the batch sub-axis, then fold lanes down to one 128-wide vreg row
        pvec = jnp.sum(diff, axis=(0, 1))                                  # (THW,)
        acc = pvec[0:128]
        for k in range(1, thw // 128):                  # static unroll, cheap VPU adds
            acc = acc + pvec[k * 128:(k + 1) * 128]
        tile = jnp.where(sub == 0, acc[None, :], 0.0)                      # (8,128)
    else:
        # odd spatial sizes: one full cross-lane reduce per (large) block is cheap
        total = jnp.sum(diff)
        lane = jax.lax.broadcasted_iota(jnp.int32, (8, 128), 1)
        tile = jnp.where((sub == 0) & (lane == 0), total, 0.0)
    o_ref[...] = tile[None, None]


def _largest_aligned_divisor(total, align, cap):
    """Largest multiple of `align` that divides `total` and is <= cap (or None)."""
    best = None
    k = align
    lim = min(total, cap)
    while k <= lim:
        if total % k == 0:
            best = k
        k += align
    return best


def _largest_divisor_leq(total, cap):
    for d in range(min(total, max(1, cap)), 0, -1):
        if total % d == 0:
            return d
    return 1


def cross_entropy_2d(logits_nchw, target_nhw, weight=None, reduction=True,
                     ignore_index=-100, *,
                     target_block_bytes=2 * 1024 * 1024, max_lanes=4096):
    """Pallas implementation of cross_entropy_2D.forward (weight=None path)."""
    # TODO(synk): per-class `weight` vector (weighted NLL) is not implemented;
    # only the reference module's default path (weight=None) is translated.
    assert weight is None
    n, c, h, w = logits_nchw.shape
    hw = h * w
    x = logits_nchw.reshape(n, c, hw)                   # free reshape, native dtype
    t = target_nhw.reshape(n, 1, hw).astype(jnp.int32)  # (n,1,hw): keeps blocks aligned

    itemsize = jnp.dtype(x.dtype).itemsize
    # Spatial tile: a multiple of 128 lanes dividing HW (falls back to full HW),
    # capped so a logits block stays ~MiB-sized (safe under default scoped VMEM
    # with double buffering, large enough to hit HBM roofline).
    lane_cap = max(128, min(max_lanes, target_block_bytes // (c * itemsize)))
    thw = _largest_aligned_divisor(hw, 128, lane_cap) or hw
    # Batch tile: fold several batches per grid step so each block is MiB-scale
    # instead of KiB-scale (amortizes per-grid-step pipeline overhead).
    nb_cap = max(1, target_block_bytes // (c * thw * itemsize))
    nb = _largest_divisor_leq(n, nb_cap)

    grid = (n // nb, hw // thw)
    kernel = functools.partial(_ce2d_kernel, ignore_index=int(ignore_index))

    partials = pl.pallas_call(
        kernel,
        out_shape=jax.ShapeDtypeStruct((grid[0], grid[1], 8, 128), jnp.float32),
        grid_spec=pltpu.PrefetchScalarGridSpec(
            num_scalar_prefetch=0,
            grid=grid,
            in_specs=[
                pl.BlockSpec((nb, c, thw), lambda i, j: (i, 0, j)),
                pl.BlockSpec((nb, 1, thw), lambda i, j: (i, 0, j)),
            ],
            out_specs=pl.BlockSpec((1, 1, 8, 128), lambda i, j: (i, j, 0, 0)),
        ),
        compiler_params=pltpu.CompilerParams(
            dimension_semantics=("parallel", "parallel"),
            vmem_limit_bytes=32 * 1024 * 1024,
        ),
    )(x, t)

    loss = jnp.sum(partials)
    if reduction:
        loss = loss / float(n * h * w)
    return loss


def _reference(logits_nchw, target_nhw, reduction=True, ignore_index=-100):
    n, c, h, w = logits_nchw.shape
    log_p = jax.nn.log_softmax(logits_nchw.astype(jnp.float32), axis=1)
    log_p = jnp.transpose(log_p, (0, 2, 3, 1)).reshape(-1, c)
    tgt = target_nhw.reshape(-1)
    safe = jnp.clip(tgt, 0, c - 1)
    nll = -jnp.take_along_axis(log_p, safe[:, None], axis=1)[:, 0]
    nll = jnp.where(tgt == ignore_index, 0.0, nll)
    loss = jnp.sum(nll)
    if reduction:
        loss = loss / float(tgt.shape[0])
    return loss


if __name__ == "__main__":
    key = jax.random.PRNGKey(0)
    k1, k2 = jax.random.split(key)

    N, C, H, W = 2, 4, 16, 16
    x = jax.random.normal(k1, (N, C, H, W), dtype=jnp.float32)
    target = jax.random.randint(k2, (N, H, W), 0, C, dtype=jnp.int32)

    # 1) default path, f32 logits (single big block, grid (1,1))
    out = jax.block_until_ready(cross_entropy_2d(x, target))
    ref = _reference(x, target)
    assert jnp.allclose(out, ref, rtol=1e-5, atol=1e-5), (out, ref)

    # 2) bf16 logits stay bf16 in HBM; upcast happens inside the kernel
    xb = x.astype(jnp.bfloat16)
    out_b = jax.block_until_ready(cross_entropy_2d(xb, target))
    ref_b = _reference(xb, target)
    assert jnp.allclose(out_b, ref_b, rtol=1e-3, atol=1e-3), (out_b, ref_b)

    # 3) force a multi-program (2,2) grid with small tiles + one ignored pixel
    #    to exercise the general tiled / parallel / ignore_index path
    target_ign = target.at[0, 0, 0].set(-100)
    out_t = jax.block_until_ready(
        cross_entropy_2d(x, target_ign, target_block_bytes=2048, max_lanes=128))
    ref_t = _reference(x, target_ign)
    assert jnp.allclose(out_t, ref_t, rtol=1e-5, atol=1e-5), (out_t, ref_t)

    print("KERNEL_OK")
</pallas_src>

<mosaic_0001>
module attributes {stable_mosaic.version = 11 : i64} {
  func.func @_ce2d_kernel(%arg0: i32, %arg1: i32, %arg2: memref<2x4x256xf32, #tpu.memory_space<vmem>>, %arg3: memref<2x1x256xi32, #tpu.memory_space<vmem>>, %arg4: memref<1x1x8x128xf32, #tpu.memory_space<vmem>>) attributes {dimension_semantics = [#tpu.dimension_semantics<parallel>, #tpu.dimension_semantics<parallel>], iteration_bounds = array<i64: 1, 1>, scalar_prefetch = 0 : i64, scratch_operands = 0 : i64, tpu.core_type = #tpu.core_type<tc>, window_params = [{transform_indices = @transform_0, window_bounds = array<i64: 2, 4, 256>}, {transform_indices = @transform_1, window_bounds = array<i64: 2, 1, 256>}, {transform_indices = @transform_2, window_bounds = array<i64: 1, 1, 8, 128>}]} {
    %c0 = arith.constant 0 : index
    %c0_0 = arith.constant 0 : index
    %c0_1 = arith.constant 0 : index
    %0 = vector.load %arg2[%c0, %c0_0, %c0_1] : memref<2x4x256xf32, #tpu.memory_space<vmem>>, vector<2x4x256xf32>
    %c0_2 = arith.constant 0 : index
    %c0_3 = arith.constant 0 : index
    %c0_4 = arith.constant 0 : index
    %1 = vector.load %arg3[%c0_2, %c0_3, %c0_4] : memref<2x1x256xi32, #tpu.memory_space<vmem>>, vector<2x1x256xi32>
    %cst = arith.constant dense<0xFF800000> : vector<2x256xf32>
    %2 = vector.multi_reduction <maximumf>, %0, %cst [1] : vector<2x4x256xf32> to vector<2x256xf32>
    %3 = vector.shape_cast %2 : vector<2x256xf32> to vector<2x1x256xf32>
    %4 = vector.broadcast %3 : vector<2x1x256xf32> to vector<2x4x256xf32>
    %5 = arith.subf %0, %4 : vector<2x4x256xf32>
    %6 = math.exp %5 : vector<2x4x256xf32>
    %cst_5 = arith.constant dense<0.000000e+00> : vector<2x256xf32>
    %7 = vector.multi_reduction <add>, %6, %cst_5 [1] : vector<2x4x256xf32> to vector<2x256xf32>
    %8 = vector.shape_cast %7 : vector<2x256xf32> to vector<2x1x256xf32>
    %9 = math.log %8 : vector<2x1x256xf32>
    %10 = arith.addf %9, %3 : vector<2x1x256xf32>
    %11 = tpu.iota {dimensions = array<i32: 1>} : vector<2x4x256xi32>
    %12 = vector.broadcast %1 : vector<2x1x256xi32> to vector<2x4x256xi32>
    %13 = arith.cmpi eq, %11, %12 : vector<2x4x256xi32>
    %cst_6 = arith.constant 0.000000e+00 : f32
    %14 = vector.broadcast %cst_6 : f32 to vector<2x4x256xf32>
    %15 = arith.select %13, %0, %14 : vector<2x4x256xi1>, vector<2x4x256xf32>
    %cst_7 = arith.constant dense<0.000000e+00> : vector<2x256xf32>
    %16 = vector.multi_reduction <add>, %15, %cst_7 [1] : vector<2x4x256xf32> to vector<2x256xf32>
    %17 = vector.shape_cast %16 : vector<2x256xf32> to vector<2x1x256xf32>
    %18 = arith.subf %10, %17 : vector<2x1x256xf32>
    %c-100_i32 = arith.constant -100 : i32
    %19 = vector.broadcast %c-100_i32 : i32 to vector<2x1x256xi32>
    %20 = arith.cmpi ne, %1, %19 : vector<2x1x256xi32>
    %cst_8 = arith.constant 0.000000e+00 : f32
    %21 = vector.broadcast %cst_8 : f32 to vector<2x1x256xf32>
    %22 = arith.select %20, %18, %21 : vector<2x1x256xi1>, vector<2x1x256xf32>
    %23 = tpu.iota {dimensions = array<i32: 0>} : vector<8x128xi32>
    %cst_9 = arith.constant dense<0.000000e+00> : vector<256xf32>
    %24 = vector.multi_reduction <add>, %22, %cst_9 [0, 1] : vector<2x1x256xf32> to vector<256xf32>
    %25 = vector.extract_strided_slice %24 {offsets = [0], sizes = [128], strides = [1]} : vector<256xf32> to vector<128xf32>
    %26 = vector.extract_strided_slice %24 {offsets = [128], sizes = [128], strides = [1]} : vector<256xf32> to vector<128xf32>
    %27 = arith.addf %25, %26 : vector<128xf32>
    %c0_i32 = arith.constant 0 : i32
    %28 = vector.broadcast %c0_i32 : i32 to vector<8x128xi32>
    %29 = arith.cmpi eq, %23, %28 : vector<8x128xi32>
    %30 = vector.shape_cast %27 : vector<128xf32> to vector<1x128xf32>
    %cst_10 = arith.constant 0.000000e+00 : f32
    %31 = vector.shape_cast %30 : vector<1x128xf32> to vector<1x128xf32>
    %32 = vector.broadcast %31 : vector<1x128xf32> to vector<8x128xf32>
    %33 = vector.broadcast %cst_10 : f32 to vector<8x128xf32>
    %34 = arith.select %29, %32, %33 : vector<8x128xi1>, vector<8x128xf32>
    %35 = vector.shape_cast %34 : vector<8x128xf32> to vector<1x1x8x128xf32>
    %c0_11 = arith.constant 0 : index
    %c0_12 = arith.constant 0 : index
    %c0_13 = arith.constant 0 : index
    %c0_14 = arith.constant 0 : index
    %36 = vector.load %arg4[%c0_11, %c0_12, %c0_13, %c0_14] : memref<1x1x8x128xf32, #tpu.memory_space<vmem>>, vector<1x1x8x128xf32>
    tpu.vector_store %arg4[%c0_11, %c0_12, %c0_13, %c0_14], %35 {strides = array<i32>} : memref<1x1x8x128xf32, #tpu.memory_space<vmem>>, vector<1x1x8x128xf32>,
    return
  }
  func.func @transform_0(%arg0: i32, %arg1: i32) -> (i32, i32, i32) {
    %c0_i32 = arith.constant 0 : i32
    %c0_i32_0 = arith.constant 0 : i32
    return %arg0, %c0_i32, %arg1 : i32, i32, i32
  }
  func.func @transform_1(%arg0: i32, %arg1: i32) -> (i32, i32, i32) {
    %c0_i32 = arith.constant 0 : i32
    %c0_i32_0 = arith.constant 0 : i32
    return %arg0, %c0_i32, %arg1 : i32, i32, i32
  }
  func.func @transform_2(%arg0: i32, %arg1: i32) -> (i32, i32, i32, i32) {
    %c0_i32 = arith.constant 0 : i32
    %c0_i32_0 = arith.constant 0 : i32
    %c0_i32_1 = arith.constant 0 : i32
    return %arg0, %arg1, %c0_i32, %c0_i32_0 : i32, i32, i32, i32
  }
}

</mosaic_0001>

<bundles_post_ra>
// kernel: tpu_custom_call.1
= control target key start
LH: loop header
LB: loop body
LE: loop exit
PB: predicated region body
PF: predicated region fallthrough
CT: control target
= control target key end

     0   :  { %7 = vsyncpa [#allocation3], 0  ;;  %s557_s0 = inlined_call_operand.hbm [shape: f32[2,4,256], index: 0, kind: input, shape index: {}]   ;;  %s558_s1 = inlined_call_operand.hbm [shape: s32[2,1,256], index: 1, kind: input, shape index: {}]   ;;  %s559_s2 = inlined_call_operand.hbm [shape: f32[1,1,8,128], index: 2, kind: output, shape index: {}]  }
   0x1   :  { %8 = vsyncpa [#allocation6], 0 }
   0x2   :  { %9 = vsyncpa [#allocation4], 0  ;;  %s392_s9 = smov [#allocation2]   ;;  %s320_s13 = scalar_lea.hbm %s557_s0, 256 }
   0x3   :  { %s15_s10 = sshll.u32 %s392_s9, 4  ;;  %p321_p0 = scmp.ne.s32.totalorder %s557_s0, %s320_s13  ;;  %s16_s10 = int_to_ptr.vmem [resolvable:$true] %s15_s10 }
   0x4   :  { %p324_p1 = scmp.lt.u32.totalorder %s320_s13, %s557_s0 }
   0x6   :  { %p326_p2 = pnand %p324_p1, %p321_p0 }
   0x8   :  { %329 = shalt.err (!%p326_p2)
}
   0x9   :  { %s330_s18 = scalar_lea.vmem %s16_s10, 256  ;;  %p335_p4 = scmp.lt.s32.totalorder %s16_s10, %s16_s10 }
   0xa   :  { %p331_p3 = scmp.ne.s32.totalorder %s16_s10, %s330_s18  ;;  %p336_p5 = scmp.lt.s32.totalorder %s330_s18, %s330_s18 }
   0xc   :  { %p337_p6 = por %p336_p5, %p335_p4 }
   0xe   :  { %p338_p7 = pnand %p337_p6, %p331_p3 }
  0x10   :  { %341 = shalt.err (!%p338_p7)
}
  0x11   :  { %s393_s19 = smov 128   ;;  %s394_s20 = smov 8  }
  0x12   :  { %21 = dma.hbm_to_vmem [thread:$0]  %s557_s0, 256, %s16_s10, [#allocation3], %s393_s19, %s393_s19, %s394_s20  }
  0x13   :  { %s395_s23 = smov [#allocation5]   ;;  %s342_s27 = scalar_lea.hbm %s558_s1, 64 }
  0x14   :  { %s27_s24 = sshll.u32 %s395_s23, 4  ;;  %p343_p8 = scmp.ne.s32.totalorder %s558_s1, %s342_s27  ;;  %s28_s24 = int_to_ptr.vmem [resolvable:$true] %s27_s24 }
  0x15   :  { %p346_p9 = scmp.lt.u32.totalorder %s342_s27, %s558_s1 }
  0x17   :  { %p348_p10 = pnand %p346_p9, %p343_p8 }
  0x19   :  { %351 = shalt.err (!%p348_p10)
}
  0x1a   :  { %s352_s4 = scalar_lea.vmem %s28_s24, 64  ;;  %p357_p12 = scmp.lt.s32.totalorder %s28_s24, %s28_s24 }
  0x1b   :  { %p353_p11 = scmp.ne.s32.totalorder %s28_s24, %s352_s4  ;;  %p358_p13 = scmp.lt.s32.totalorder %s352_s4, %s352_s4 }
  0x1d   :  { %p359_p0 = por %p358_p13, %p357_p12 }
  0x1f   :  { %p360_p1 = pnand %p359_p0, %p353_p11 }
  0x21   :  { %363 = shalt.err (!%p360_p1)
}
  0x22   :  { %s396_s0 = smov 32   ;;  %s397_s5 = smov 2  }
  0x23   :  { %33 = dma.hbm_to_vmem [thread:$0]  %s558_s1, 64, %s28_s24, [#allocation6], %s396_s0, %s396_s0, %s397_s5  }
  0x24   :  { %386 = dma.done.wait [#allocation3], 256  }
  0x25   :  { %387 = vsyncadd [#allocation3], 4294967040 }
  0x26   :  { %388 = dma.done.wait [#allocation6], 64  }
  0x27   :  { %389 = vsyncadd [#allocation6], 4294967232  ;;  %vm50_vm0 = vcmask 1043456   ;;  %v439_v0 = vld [vmem:[#allocation2] sm:$0xff]  ;;  %v441_v1 = vld [vmem:[#allocation2 + $0x8] sm:$0xff]  ;;  %v139_v26 = vlaneseq  ;;  %vm259_vm7 = vcmask 1040384  }
  0x28   :  { %v445_v2 = vcombine.high %v439_v0, %v439_v0  ;;  %v449_v3 = vcombine.high %v441_v1, %v441_v1  ;;  %v51_v4 = vsel %vm50_vm0, %v439_v0, -inf  ;;  %v65_v5 = vsel %vm50_vm0, %v441_v1, -inf  ;;  %v478_v41 = vld [vmem:[#allocation5] sm:$0x3]  ;;  %v480_v42 = vld [vmem:[#allocation5 + $0x2] sm:$0x3] }
  0x29   :  { %v52_v6 = vrot.slane %v51_v4, 4  ;;  %v66_v7 = vrot.slane %v65_v5, 4  ;;  %v471_v35 = vshrl.u32 %v139_v26, 7  ;;  %vm197_vm5 = vcmp.ne.s32.totalorder %v478_v41, 4294967196  ;;  %s399_s1 = smov [#allocation7]  }
  0x2a   :  { %v58_v8 = vsel %vm50_vm0, %v445_v2, -inf  ;;  %v72_v9 = vsel %vm50_vm0, %v449_v3, -inf  ;;  %vm198_vm6 = vcmp.ne.s32.totalorder %v480_v42, 4294967196  ;;  %s288_s8 = sshll.u32 %s399_s1, 4  ;;  %s289_s8 = int_to_ptr.vmem [resolvable:$true] %s288_s8 }
  0x2b   :  { %v53_v10 = vmax.f32 %v51_v4, %v52_v6  ;;  %v59_v11 = vrot.slane %v58_v8, 4  ;;  %v67_v12 = vmax.f32 %v65_v5, %v66_v7  ;;  %v73_v13 = vrot.slane %v72_v9, 4  ;;  %s364_s9 = scalar_lea.vmem %s289_s8, 128  ;;  %p369_p3 = scmp.lt.s32.totalorder %s289_s8, %s289_s8 }
  0x2c   :  { %v476_v40 = vsub.s32 0, %v471_v35  ;;  %v483_v43 = vsub.s32 1, %v471_v35  ;;  %vm279_vm8 = vcmp.eq.s32.totalorder %v471_v35, 0  ;;  %p365_p2 = scmp.ne.s32.totalorder %s289_s8, %s364_s9  ;;  %p370_p4 = scmp.lt.s32.totalorder %s364_s9, %s364_s9 }
  0x2d   :  { %v54_v14 = vrot.slane %v53_v10, 2  ;;  %v60_v15 = vmax.f32 %v58_v8, %v59_v11  ;;  %v68_v16 = vrot.slane %v67_v12, 2  ;;  %v74_v17 = vmax.f32 %v72_v9, %v73_v13 }
  0x2e   :  { %v144_v44 = vrot.slane %v478_v41, %v476_v40  ;;  %v152_v45 = vrot.slane %v480_v42, %v476_v40  ;;  %v148_v46 = vrot.slane %v478_v41, %v483_v43  ;;  %v156_v47 = vrot.slane %v480_v42, %v483_v43  ;;  %p371_p5 = por %p370_p4, %p369_p3 }
  0x2f   :  { %v55_v18 = vmax.f32 %v53_v10, %v54_v14  ;;  %v61_v19 = vrot.slane %v60_v15, 2  ;;  %v69_v20 = vmax.f32 %v67_v12, %v68_v16  ;;  %v75_v21 = vrot.slane %v74_v17, 2 }
  0x30   :  { %vm494_vm1 = vcmp.eq.s32.totalorder %v471_v35, %v144_v44  ;;  %vm499_vm2 = vcmp.eq.s32.totalorder %v471_v35, %v152_v45  ;;  %vm504_vm3 = vcmp.eq.s32.totalorder %v471_v35, %v148_v46  ;;  %vm509_vm4 = vcmp.eq.s32.totalorder %v471_v35, %v156_v47  ;;  %p372_p6 = pnand %p371_p5, %p365_p2 }
  0x31   :  { %v56_v22 = vrot.slane %v55_v18, 1  ;;  %v62_v23 = vmax.f32 %v60_v15, %v61_v19  ;;  %v70_v24 = vrot.slane %v69_v20, 1  ;;  %v76_v25 = vmax.f32 %v74_v17, %v75_v21 }
  0x32   :  { %v161_v52 = vsel %vm494_vm1, %v439_v0, 0.0  ;;  %v163_v54 = vsel %vm499_vm2, %v441_v1, 0.0  ;;  %v162_v58 = vsel %vm504_vm3, %v445_v2, 0.0  ;;  %v164_v59 = vsel %vm509_vm4, %v449_v3, 0.0 }
  0x33   :  { %v459_v27 = vmax.f32 %v55_v18, %v56_v22  ;;  %v63_v28 = vrot.slane %v62_v23, 1  ;;  %v461_v29 = vmax.f32 %v69_v20, %v70_v24  ;;  %v77_v30 = vrot.slane %v76_v25, 1 }
  0x34   :  { %v165_v63 = vsel %vm50_vm0, %v161_v52, 0.0  ;;  %v179_v4 = vsel %vm50_vm0, %v163_v54, 0.0  ;;  %v172_v2 = vsel %vm50_vm0, %v162_v58, 0.0  ;;  %v186_v10 = vsel %vm50_vm0, %v164_v59, 0.0 }
  0x35   :  { %v463_v31 = vmax.f32 %v62_v23, %v63_v28  ;;  %v465_v32 = vmax.f32 %v76_v25, %v77_v30  ;;  %v166_v3 = vrot.slane %v165_v63, 4  ;;  %v180_v13 = vrot.slane %v179_v4, 4 }
  0x36   :  { %v173_v16 = vrot.slane %v172_v2, 4  ;;  %v187_v19 = vrot.slane %v186_v10, 4 }
  0x37   :  { %v83_v33 = vcombine.low %v459_v27, %v463_v31  ;;  %v84_v34 = vcombine.low %v461_v29, %v465_v32  ;;  %v167_v22 = vadd.f32 %v166_v3, %v165_v63  ;;  %v181_v25 = vadd.f32 %v180_v13, %v179_v4 }
  0x38   :  { %v174_v30 = vadd.f32 %v173_v16, %v172_v2 }
  0x39   :  { %v87_v36 = vsub.f32 %v439_v0, %v83_v33  ;;  %v88_v37 = vsub.f32 %v441_v1, %v84_v34  ;;  %v182_v45 = vrot.slane %v181_v25, 2 }
  0x3a   :  { %v175_v47 = vrot.slane %v174_v30, 2 }
  0x3b   :  { %v89_v38 = vmul.f32 1.442695, %v87_v36  ;;  %v91_v39 = vmul.f32 1.442695, %v88_v37  ;;  %v188_v36 = vadd.f32 %v187_v19, %v186_v10  ;;  %v183_v50 = vadd.f32 %v182_v45, %v181_v25 }
  0x3c   :  { %v176_v51 = vadd.f32 %v175_v47, %v174_v30 }
  0x3d   :  { %308 = vpow2.f32 %v89_v38  ;;  %v189_v48 = vrot.slane %v188_v36, 2  ;;  %v184_v54 = vrot.slane %v183_v50, 1 }
  0x3e   :  { %310 = vpow2.f32 %v91_v39  ;;  %v168_v39 = vrot.slane %v167_v22, 2 }
  0x3f   :  { %v190_v52 = vadd.f32 %v189_v48, %v188_v36 }
  0x40   :  { %v169_v49 = vadd.f32 %v168_v39, %v167_v22 }
  0x41   :  { %v191_v59 = vrot.slane %v190_v52, 1 }
  0x43   :  { %v192_v3 = vadd.f32 %v191_v59, %v190_v52 }
  0x47   :  { %v309_v53 = vpop.eup %308 }
  0x48   :  { %v311_v55 = vpop.eup %310  ;;  %v95_v56 = vcombine.high %v309_v53, %v309_v53  ;;  %v99_v57 = vsel %vm50_vm0, %v309_v53, 0.0  ;;  %v170_v53 = vrot.slane %v169_v49, 1 }
  0x49   :  { %v96_v60 = vcombine.high %v311_v55, %v311_v55  ;;  %v100_v61 = vrot.slane %v99_v57, 4  ;;  %v113_v62 = vsel %vm50_vm0, %v311_v55, 0.0  ;;  %v177_v55 = vrot.slane %v176_v51, 1 }
  0x4a   :  { %v106_v0 = vsel %vm50_vm0, %v95_v56, 0.0  ;;  %v114_v1 = vrot.slane %v113_v62, 4  ;;  %v398_v56 = vmov 1966171168  }
  0x4b   :  { %v101_v5 = vadd.f32 %v100_v61, %v99_v57  ;;  %v107_v6 = vrot.slane %v106_v0, 4  ;;  %v120_v7 = vsel %vm50_vm0, %v96_v60, 0.0  ;;  %v205_v57 = vunpack.c.l.s4 %v398_v56 }
  0x4c   :  { %v115_v8 = vadd.f32 %v114_v1, %v113_v62  ;;  %v121_v9 = vrot.slane %v120_v7, 4  ;;  %v171_v62 = vadd.f32 %v170_v53, %v169_v49  ;;  %v185_v1 = vadd.f32 %v184_v54, %v183_v50 }
  0x4d   :  { %v102_v11 = vrot.slane %v101_v5, 2  ;;  %v108_v12 = vadd.f32 %v107_v6, %v106_v0  ;;  %v206_v2 = vunpack.c.0.s8 %v205_v57 }
  0x4e   :  { %v116_v14 = vrot.slane %v115_v8, 2  ;;  %v122_v15 = vadd.f32 %v121_v9, %v120_v7  ;;  %v178_v7 = vadd.f32 %v177_v55, %v176_v51 }
  0x4f   :  { %v103_v17 = vadd.f32 %v102_v11, %v101_v5  ;;  %v109_v18 = vrot.slane %v108_v12, 2 }
  0x50   :  { %v117_v20 = vadd.f32 %v116_v14, %v115_v8  ;;  %v123_v21 = vrot.slane %v122_v15, 2 }
  0x51   :  { %v104_v23 = vrot.slane %v103_v17, 1  ;;  %v110_v24 = vadd.f32 %v109_v18, %v108_v12 }
  0x52   :  { %v118_v26 = vrot.slane %v117_v20, 1  ;;  %v124_v28 = vadd.f32 %v123_v21, %v122_v15  ;;  %v209_v15 = vsub.s32 %v206_v2, %v471_v35 }
  0x53   :  { %v105_v33 = vadd.f32 %v104_v23, %v103_v17  ;;  %v111_v34 = vrot.slane %v110_v24, 1 }
  0x54   :  { %v119_v37 = vadd.f32 %v118_v26, %v117_v20  ;;  %v125_v38 = vrot.slane %v124_v28, 1 }
  0x55   :  { %v112_v44 = vadd.f32 %v111_v34, %v110_v24  ;;  %312 = vlog2.f32 %v105_v33 }
  0x56   :  { %v126_v46 = vadd.f32 %v125_v38, %v124_v28  ;;  %314 = vlog2.f32 %v119_v37 }
  0x57   :  { %316 = vlog2.f32 %v112_v44 }
  0x58   :  { %318 = vlog2.f32 %v126_v46 }
  0x5f   :  { %v313_v58 = vpop.eup %312 }
  0x60   :  { %v315_v60 = vpop.eup %314  ;;  %v128_v61 = vmul.f32 0.6931472, %v313_v58 }
  0x61   :  { %v317_v63 = vpop.eup %316  ;;  %v132_v0 = vmul.f32 0.6931472, %v315_v60 }
  0x62   :  { %v319_v4 = vpop.eup %318  ;;  %v130_v5 = vmul.f32 0.6931472, %v317_v63  ;;  %v135_v6 = vadd.f32 %v128_v61, %v459_v27 }
  0x63   :  { %v134_v8 = vmul.f32 0.6931472, %v319_v4  ;;  %v137_v9 = vadd.f32 %v132_v0, %v461_v29 }
  0x64   :  { %v136_v10 = vadd.f32 %v130_v5, %v463_v31  ;;  %v193_v11 = vsub.f32 %v135_v6, %v171_v62 }
  0x65   :  { %v138_v12 = vadd.f32 %v134_v8, %v465_v32  ;;  %v195_v13 = vsub.f32 %v137_v9, %v185_v1 }
  0x66   :  { %v194_v14 = vsub.f32 %v136_v10, %v178_v7 }
  0x67   :  { %v196_v16 = vsub.f32 %v138_v12, %v192_v3 }
  0x68   :  { %v203_v17 = vcombine.low %v193_v11, %v194_v14 }
  0x69   :  { %v218_v18 = vcombine.low %v195_v13, %v196_v16 }
  0x6a   :  { %v210_v19 = vrot.slane %v203_v17, %v209_v15 }
  0x6b   :  { %v225_v27 = vrot.slane %v218_v18, %v209_v15 }
  0x6c   :  { %v217_v29 = vrot.slane %v210_v19, %v209_v15 }
  0x6d   :  { %v232_v20 = vrot.slane %v225_v27, %v209_v15 }
  0x6e   :  { %v235_v21 = vsel %vm197_vm5, %v217_v29, 0.0 }
  0x6f   :  { %v236_v31 = vsel %vm198_vm6, %v232_v20, 0.0  ;;  %v242_v32 = vrot.slane %v235_v21, %v476_v40  ;;  %v246_v22 = vrot.slane %v235_v21, %v483_v43 }
  0x70   :  { %v250_v23 = vrot.slane %v236_v31, %v476_v40  ;;  %v254_v24 = vrot.slane %v236_v31, %v483_v43 }
  0x71   :  { %v260_v25 = vsel %vm259_vm7, %v242_v32, 0.0  ;;  %v269_v26 = vsel %vm259_vm7, %v246_v22, 0.0 }
  0x72   :  { %v261_v28 = vsel %vm259_vm7, %v250_v23, 0.0  ;;  %v270_v41 = vsel %vm259_vm7, %v254_v24, 0.0 }
  0x73   :  { %v262_v30 = vadd.f32 %v261_v28, %v260_v25  ;;  %v271_v33 = vadd.f32 %v270_v41, %v269_v26 }
  0x75   :  { %v263_v42 = vrot.slane %v262_v30, 4  ;;  %v272_v34 = vrot.slane %v271_v33, 4 }
  0x77   :  { %v264_v36 = vadd.f32 %v263_v42, %v262_v30  ;;  %v273_v37 = vadd.f32 %v272_v34, %v271_v33 }
  0x79   :  { %v265_v38 = vrot.slane %v264_v36, 2  ;;  %v274_v39 = vrot.slane %v273_v37, 2 }
  0x7b   :  { %v266_v44 = vadd.f32 %v265_v38, %v264_v36  ;;  %v275_v45 = vadd.f32 %v274_v39, %v273_v37 }
  0x7d   :  { %v267_v46 = vrot.slane %v266_v44, 1  ;;  %v276_v47 = vrot.slane %v275_v45, 1 }
  0x7f   :  { %v268_v48 = vadd.f32 %v267_v46, %v266_v44  ;;  %v277_v40 = vadd.f32 %v276_v47, %v275_v45 }
  0x81   :  { %v278_v43 = vadd.f32 %v277_v40, %v268_v48 }
  0x83   :  { %v280_v49 = vsel %vm279_vm8, %v278_v43, 0.0 }
  0x84   :  { %281 = vst [vmem:[#allocation7] sm:$0xff] %v280_v49 }
  0x85   :  { %375 = shalt.err (!%p372_p6)
}
  0x86   :  { %s376_s12 = scalar_lea.hbm %s559_s2, 128 }
  0x87   :  { %p377_p7 = scmp.ne.s32.totalorder %s559_s2, %s376_s12  ;;  %p380_p8 = scmp.lt.u32.totalorder %s376_s12, %s559_s2 }
  0x89   :  { %p382_p9 = pnand %p380_p8, %p377_p7 }
  0x8b   :  { %385 = shalt.err (!%p382_p9)
}
  0x8c   :  { %291 = dma.vmem_to_hbm [thread:$0]  %s289_s8, 128, %s559_s2, [#allocation4]  }
  0x8d   :  { %390 = dma.done.wait [#allocation4], 128  }
  0x8e   :  { %391 = vsyncadd [#allocation4], 4294967168 }
  0x8f   :  { %295 = vsyncpa [#allocation3], 1 }
  0x90   :  { %296 = vsyncpa [#allocation6], 1 }
  0x91   :  { %297 = vsyncpa [#allocation4], 1 }

</bundles_post_ra>
